<compile_context>
chip_gen: v7x
topology: tpu7x:2x2x1
jax: 0.10.0
libtpu: 0.0.40
codegen_flags: <defaults>
</compile_context>

<pallas_src>
import functools

import jax
import jax.numpy as jnp
from jax import lax
from jax.experimental import pallas as pl
from jax.experimental.pallas import tpu as pltpu


# ----------------------------- Pallas kernels -------------------------------

def _tap(x_ref, k, *, dilation, stride, T_out, V):
    """Slice the (Cin, T_pad*V) input window for temporal tap k -> (Cin, T_out*V)."""
    TV = T_out * V
    start = k * dilation * V            # static Python int -> aligned static slice
    if stride == 1:
        return x_ref[0, :, pl.ds(start, TV)]
    # TODO(synk): stride > 1 uses an in-kernel strided relayout (reshape + strided
    # slice); correct by construction but not exercised by the demo shapes.
    span = ((T_out - 1) * stride + 1) * V
    xs = x_ref[0, :, pl.ds(start, span)]
    cin = xs.shape[0]
    return xs.reshape(cin, span // V, V)[:, ::stride, :].reshape(cin, TV)


def _conv_stats_kernel(x_ref, w_ref, y_ref, psum_ref, pssq_ref, *,
                       K, dilation, stride, T_out, V):
    """Per sample n: y = sum_k W_k @ X_k (f32 MXU acc); store y (bf16) + partial stats."""
    acc = jnp.dot(w_ref[0],
                  _tap(x_ref, 0, dilation=dilation, stride=stride, T_out=T_out, V=V),
                  preferred_element_type=jnp.float32)
    for k in range(1, K):               # K is tiny and static -> full unroll
        acc = acc + jnp.dot(
            w_ref[k],
            _tap(x_ref, k, dilation=dilation, stride=stride, T_out=T_out, V=V),
            preferred_element_type=jnp.float32)
    y_ref[0] = acc.astype(y_ref.dtype)
    psum_ref[0] = jnp.sum(acc, axis=1, keepdims=True)             # (Cout, 1)
    pssq_ref[0] = jnp.sum(jnp.square(acc), axis=1, keepdims=True)  # (Cout, 1)


def _bn_apply_kernel(y_ref, scale_ref, shift_ref, o_ref):
    """Per sample n: out = y * scale + shift (fused BN normalize + affine, lane-dense)."""
    o_ref[0] = y_ref[0].astype(jnp.float32) * scale_ref[...] + shift_ref[...]


# ------------------------------ wrapper --------------------------------------

def temporal_conv_forward(x, conv_w, conv_bias, bn_gamma, bn_beta,
                          kernel_size, stride=1, dilation=1, eps=1e-5):
    """Forward pass of TemporalConv. x: (N, C_in, T, V) float32, NCHW in / NCHW out."""
    N, Cin, T, V = x.shape
    Cout = conv_w.shape[0]
    K = kernel_size
    pad = (K + (K - 1) * (dilation - 1) - 1) // 2
    T_pad = T + 2 * pad
    T_out = (T_pad - dilation * (K - 1) - 1) // stride + 1
    TV = T_out * V
    M = N * TV

    # --- glue: temporal zero-pad, keep NCHW, flatten (T_pad, V) onto the lane axis ---
    xp = jnp.pad(x.astype(jnp.float32), ((0, 0), (0, 0), (pad, pad), (0, 0)))
    xf = xp.reshape(N, Cin, T_pad * V)

    # conv weight (Cout, Cin, K, 1) -> (K, Cout, Cin): one (Cout, Cin) matrix per tap
    Wk = conv_w[..., 0].transpose(2, 0, 1).astype(jnp.float32)

    kern1 = functools.partial(_conv_stats_kernel, K=K, dilation=dilation,
                              stride=stride, T_out=T_out, V=V)

    # Pass 1: conv as K shifted matmuls + per-sample partial channel statistics.
    # All block dims except the batch axis are full array extents, so there are no
    # divisibility constraints and the single grid axis is fully parallel.
    # TODO(synk): for very large T*V / Cout add a T-tile grid axis to bound the
    # per-step VMEM footprint (v7x scoped default is 32 MiB of 64 MiB).
    y, psum, pssq = pl.pallas_call(
        kern1,
        out_shape=(jax.ShapeDtypeStruct((N, Cout, TV), jnp.bfloat16),
                   jax.ShapeDtypeStruct((N, Cout, 1), jnp.float32),
                   jax.ShapeDtypeStruct((N, Cout, 1), jnp.float32)),
        grid_spec=pltpu.PrefetchScalarGridSpec(
            num_scalar_prefetch=0, grid=(N,),
            in_specs=[pl.BlockSpec((1, Cin, T_pad * V), lambda n: (n, 0, 0)),
                      pl.BlockSpec((K, Cout, Cin), lambda n: (0, 0, 0))],
            out_specs=(pl.BlockSpec((1, Cout, TV), lambda n: (n, 0, 0)),
                       pl.BlockSpec((1, Cout, 1), lambda n: (n, 0, 0)),
                       pl.BlockSpec((1, Cout, 1), lambda n: (n, 0, 0)))),
        compiler_params=pltpu.CompilerParams(
            dimension_semantics=("parallel",)),
    )(xf, Wk)

    # --- glue: finalize training-mode BatchNorm2d statistics from tiny partials ---
    sum_c = jnp.sum(psum[:, :, 0], axis=0)                       # (Cout,)
    ssq_c = jnp.sum(pssq[:, :, 0], axis=0)                       # (Cout,)
    mean_conv = sum_c / M
    # TODO(synk): E[y^2]-E[y]^2 in f32 can cancel for large-mean inputs; a mean-first
    # second stats pass would be more robust.
    var = jnp.maximum(ssq_c / M - mean_conv * mean_conv, 0.0)    # biased variance
    inv_std = lax.rsqrt(var + eps)
    scale = bn_gamma.astype(jnp.float32) * inv_std
    # (conv + bias - (mean_conv + bias)) * scale + beta == (conv - mean_conv)*scale + beta
    shift = bn_beta.astype(jnp.float32) - mean_conv * scale
    # TODO(synk): running_mean/running_var momentum updates (mean_conv + bias, var)
    # are training-time state, not part of the returned tensor.
    del conv_bias  # algebraically cancelled by the batch-mean subtraction above

    # Pass 2: fused normalize + affine, lane-dense (Cout, T_out*V) stores, NCHW order.
    out = pl.pallas_call(
        _bn_apply_kernel,
        out_shape=jax.ShapeDtypeStruct((N, Cout, TV), jnp.float32),
        grid_spec=pltpu.PrefetchScalarGridSpec(
            num_scalar_prefetch=0, grid=(N,),
            in_specs=[pl.BlockSpec((1, Cout, TV), lambda n: (n, 0, 0)),
                      pl.BlockSpec((Cout, 1), lambda n: (0, 0)),
                      pl.BlockSpec((Cout, 1), lambda n: (0, 0))],
            out_specs=pl.BlockSpec((1, Cout, TV), lambda n: (n, 0, 0))),
        compiler_params=pltpu.CompilerParams(
            dimension_semantics=("parallel",)),
    )(y, scale.reshape(Cout, 1), shift.reshape(Cout, 1))

    # (N, Cout, T_out*V) -> (N, Cout, T_out, V): pure reshape, already NCHW.
    return out.reshape(N, Cout, T_out, V)


# -------------------------- pure-JAX reference --------------------------------

def reference(x, conv_w, conv_bias, gamma, beta, kernel_size, stride=1, dilation=1, eps=1e-5):
    pad = (kernel_size + (kernel_size - 1) * (dilation - 1) - 1) // 2
    y = lax.conv_general_dilated(
        x, conv_w, window_strides=(stride, 1),
        padding=((pad, pad), (0, 0)),
        rhs_dilation=(dilation, 1),
        dimension_numbers=('NCHW', 'OIHW', 'NCHW'),
        precision=lax.Precision.HIGHEST)
    y = y + conv_bias.reshape(1, -1, 1, 1)
    mean = jnp.mean(y, axis=(0, 2, 3), keepdims=True)
    var = jnp.mean((y - mean) ** 2, axis=(0, 2, 3), keepdims=True)
    return ((y - mean) / jnp.sqrt(var + eps) * gamma.reshape(1, -1, 1, 1)
            + beta.reshape(1, -1, 1, 1))


# --------------------------------- main ---------------------------------------

if __name__ == "__main__":
    N, Cin, Cout, T, V = 2, 4, 8, 16, 16
    K, stride, dilation = 3, 1, 1

    key = jax.random.PRNGKey(0)
    k_w, k_x, k_g, k_b = jax.random.split(key, 4)

    # deterministic synthetic parameters (shapes per the module's __init__)
    conv_w = jax.random.normal(k_w, (Cout, Cin, K, 1), jnp.float32) / jnp.sqrt(Cin * K)
    conv_bias = jnp.zeros((1, Cout, 1, 1), jnp.float32)      # nn.Parameter(torch.zeros(...))
    bn_gamma = 1.0 + 0.1 * jax.random.normal(k_g, (Cout,), jnp.float32)
    bn_beta = 0.1 * jax.random.normal(k_b, (Cout,), jnp.float32)

    x = jax.random.normal(k_x, (N, Cin, T, V), jnp.float32)  # NCHW

    fwd = jax.jit(functools.partial(temporal_conv_forward,
                                    kernel_size=K, stride=stride, dilation=dilation))
    out = fwd(x, conv_w, conv_bias, bn_gamma, bn_beta)
    out = jax.block_until_ready(out)

    ref = reference(x, conv_w, conv_bias, bn_gamma, bn_beta, K, stride, dilation)
    assert out.shape == ref.shape == (N, Cout, T, V), (out.shape, ref.shape)
    assert bool(jnp.allclose(out, ref, atol=2e-2, rtol=2e-2)), "mismatch vs reference"

    print("KERNEL_OK")
</pallas_src>

<mosaic_0001>
module attributes {stable_mosaic.version = 11 : i64} {
  func.func @_conv_stats_kernel(%arg0: i32, %arg1: memref<1x4x288xf32, #tpu.memory_space<vmem>>, %arg2: memref<3x8x4xf32, #tpu.memory_space<vmem>>, %arg3: memref<1x8x256xbf16, #tpu.memory_space<vmem>>, %arg4: memref<1x8x1xf32, #tpu.memory_space<vmem>>, %arg5: memref<1x8x1xf32, #tpu.memory_space<vmem>>) attributes {dimension_semantics = [#tpu.dimension_semantics<parallel>], iteration_bounds = array<i64: 2>, scalar_prefetch = 0 : i64, scratch_operands = 0 : i64, tpu.core_type = #tpu.core_type<tc>, window_params = [{transform_indices = @transform_0, window_bounds = array<i64: 1, 4, 288>}, {pipeline_mode = #tpu.pipeline_mode<synchronous>, transform_indices = @transform_1, window_bounds = array<i64: 3, 8, 4>}, {transform_indices = @transform_2, window_bounds = array<i64: 1, 8, 256>}, {transform_indices = @transform_3, window_bounds = array<i64: 1, 8, 1>}, {transform_indices = @transform_4, window_bounds = array<i64: 1, 8, 1>}]} {
    %c0 = arith.constant 0 : index
    %c0_0 = arith.constant 0 : index
    %c0_1 = arith.constant 0 : index
    %0 = vector.load %arg2[%c0, %c0_0, %c0_1] : memref<3x8x4xf32, #tpu.memory_space<vmem>>, vector<1x8x4xf32>
    %1 = vector.shape_cast %0 : vector<1x8x4xf32> to vector<8x4xf32>
    %c0_2 = arith.constant 0 : index
    %c0_3 = arith.constant 0 : index
    %c0_4 = arith.constant 0 : index
    %2 = vector.load %arg1[%c0_2, %c0_3, %c0_4] : memref<1x4x288xf32, #tpu.memory_space<vmem>>, vector<1x4x256xf32>
    %3 = vector.shape_cast %2 : vector<1x4x256xf32> to vector<4x256xf32>
    %cst = arith.constant dense<0.000000e+00> : vector<8x256xf32>
    %4 = tpu.matmul %1, %3, %cst {dimension_numbers = #tpu.dot_dimension_numbers<[1], [0], [0], [1], [0, 0, 1, 1], [], []>} : vector<8x4xf32>, vector<4x256xf32>, vector<8x256xf32> -> vector<8x256xf32>
    %c1 = arith.constant 1 : index
    %c0_5 = arith.constant 0 : index
    %c0_6 = arith.constant 0 : index
    %5 = vector.load %arg2[%c1, %c0_5, %c0_6] : memref<3x8x4xf32, #tpu.memory_space<vmem>>, vector<1x8x4xf32>
    %6 = vector.shape_cast %5 : vector<1x8x4xf32> to vector<8x4xf32>
    %c0_7 = arith.constant 0 : index
    %c0_8 = arith.constant 0 : index
    %c16 = arith.constant 16 : index
    %7 = vector.load %arg1[%c0_7, %c0_8, %c16] : memref<1x4x288xf32, #tpu.memory_space<vmem>>, vector<1x4x256xf32>
    %8 = vector.shape_cast %7 : vector<1x4x256xf32> to vector<4x256xf32>
    %cst_9 = arith.constant dense<0.000000e+00> : vector<8x256xf32>
    %9 = tpu.matmul %6, %8, %cst_9 {dimension_numbers = #tpu.dot_dimension_numbers<[1], [0], [0], [1], [0, 0, 1, 1], [], []>} : vector<8x4xf32>, vector<4x256xf32>, vector<8x256xf32> -> vector<8x256xf32>
    %10 = arith.addf %4, %9 : vector<8x256xf32>
    %c2 = arith.constant 2 : index
    %c0_10 = arith.constant 0 : index
    %c0_11 = arith.constant 0 : index
    %11 = vector.load %arg2[%c2, %c0_10, %c0_11] : memref<3x8x4xf32, #tpu.memory_space<vmem>>, vector<1x8x4xf32>
    %12 = vector.shape_cast %11 : vector<1x8x4xf32> to vector<8x4xf32>
    %c0_12 = arith.constant 0 : index
    %c0_13 = arith.constant 0 : index
    %c32 = arith.constant 32 : index
    %13 = vector.load %arg1[%c0_12, %c0_13, %c32] : memref<1x4x288xf32, #tpu.memory_space<vmem>>, vector<1x4x256xf32>
    %14 = vector.shape_cast %13 : vector<1x4x256xf32> to vector<4x256xf32>
    %cst_14 = arith.constant dense<0.000000e+00> : vector<8x256xf32>
    %15 = tpu.matmul %12, %14, %cst_14 {dimension_numbers = #tpu.dot_dimension_numbers<[1], [0], [0], [1], [0, 0, 1, 1], [], []>} : vector<8x4xf32>, vector<4x256xf32>, vector<8x256xf32> -> vector<8x256xf32>
    %16 = arith.addf %10, %15 : vector<8x256xf32>
    %17 = arith.truncf %16 : vector<8x256xf32> to vector<8x256xbf16>
    %c0_15 = arith.constant 0 : index
    %c0_16 = arith.constant 0 : index
    %c0_17 = arith.constant 0 : index
    %18 = vector.load %arg3[%c0_15, %c0_16, %c0_17] : memref<1x8x256xbf16, #tpu.memory_space<vmem>>, vector<1x8x256xbf16>
    %19 = vector.shape_cast %18 : vector<1x8x256xbf16> to vector<8x256xbf16>
    %20 = vector.shape_cast %17 : vector<8x256xbf16> to vector<1x8x256xbf16>
    tpu.vector_store %arg3[%c0_15, %c0_16, %c0_17], %20 {strides = array<i32>} : memref<1x8x256xbf16, #tpu.memory_space<vmem>>, vector<1x8x256xbf16>,
    %cst_18 = arith.constant dense<0.000000e+00> : vector<8xf32>
    %21 = vector.multi_reduction <add>, %16, %cst_18 [1] : vector<8x256xf32> to vector<8xf32>
    %22 = vector.shape_cast %21 : vector<8xf32> to vector<8x1xf32>
    %c0_19 = arith.constant 0 : index
    %c0_20 = arith.constant 0 : index
    %c0_21 = arith.constant 0 : index
    %23 = vector.load %arg4[%c0_19, %c0_20, %c0_21] : memref<1x8x1xf32, #tpu.memory_space<vmem>>, vector<1x8x1xf32>
    %24 = vector.shape_cast %23 : vector<1x8x1xf32> to vector<8x1xf32>
    %25 = vector.shape_cast %22 : vector<8x1xf32> to vector<1x8x1xf32>
    tpu.vector_store %arg4[%c0_19, %c0_20, %c0_21], %25 {strides = array<i32>} : memref<1x8x1xf32, #tpu.memory_space<vmem>>, vector<1x8x1xf32>,
    %26 = arith.mulf %16, %16 : vector<8x256xf32>
    %cst_22 = arith.constant dense<0.000000e+00> : vector<8xf32>
    %27 = vector.multi_reduction <add>, %26, %cst_22 [1] : vector<8x256xf32> to vector<8xf32>
    %28 = vector.shape_cast %27 : vector<8xf32> to vector<8x1xf32>
    %c0_23 = arith.constant 0 : index
    %c0_24 = arith.constant 0 : index
    %c0_25 = arith.constant 0 : index
    %29 = vector.load %arg5[%c0_23, %c0_24, %c0_25] : memref<1x8x1xf32, #tpu.memory_space<vmem>>, vector<1x8x1xf32>
    %30 = vector.shape_cast %29 : vector<1x8x1xf32> to vector<8x1xf32>
    %31 = vector.shape_cast %28 : vector<8x1xf32> to vector<1x8x1xf32>
    tpu.vector_store %arg5[%c0_23, %c0_24, %c0_25], %31 {strides = array<i32>} : memref<1x8x1xf32, #tpu.memory_space<vmem>>, vector<1x8x1xf32>,
    return
  }
  func.func @transform_0(%arg0: i32) -> (i32, i32, i32) {
    %c0_i32 = arith.constant 0 : i32
    %c0_i32_0 = arith.constant 0 : i32
    %c0_i32_1 = arith.constant 0 : i32
    return %arg0, %c0_i32, %c0_i32_0 : i32, i32, i32
  }
  func.func @transform_1(%arg0: i32) -> (i32, i32, i32) {
    %c0_i32 = arith.constant 0 : i32
    %c0_i32_0 = arith.constant 0 : i32
    %c0_i32_1 = arith.constant 0 : i32
    %c0_i32_2 = arith.constant 0 : i32
    return %c0_i32, %c0_i32_0, %c0_i32_1 : i32, i32, i32
  }
  func.func @transform_2(%arg0: i32) -> (i32, i32, i32) {
    %c0_i32 = arith.constant 0 : i32
    %c0_i32_0 = arith.constant 0 : i32
    %c0_i32_1 = arith.constant 0 : i32
    return %arg0, %c0_i32, %c0_i32_0 : i32, i32, i32
  }
  func.func @transform_3(%arg0: i32) -> (i32, i32, i32) {
    %c0_i32 = arith.constant 0 : i32
    %c0_i32_0 = arith.constant 0 : i32
    %c0_i32_1 = arith.constant 0 : i32
    return %arg0, %c0_i32, %c0_i32_0 : i32, i32, i32
  }
  func.func @transform_4(%arg0: i32) -> (i32, i32, i32) {
    %c0_i32 = arith.constant 0 : i32
    %c0_i32_0 = arith.constant 0 : i32
    %c0_i32_1 = arith.constant 0 : i32
    return %arg0, %c0_i32, %c0_i32_0 : i32, i32, i32
  }
}

module attributes {stable_mosaic.version = 11 : i64} {
  func.func @_bn_apply_kernel(%arg0: i32, %arg1: memref<1x8x256xbf16, #tpu.memory_space<vmem>>, %arg2: memref<8x1xf32, #tpu.memory_space<vmem>>, %arg3: memref<8x1xf32, #tpu.memory_space<vmem>>, %arg4: memref<1x8x256xf32, #tpu.memory_space<vmem>>) attributes {dimension_semantics = [#tpu.dimension_semantics<parallel>], iteration_bounds = array<i64: 2>, scalar_prefetch = 0 : i64, scratch_operands = 0 : i64, tpu.core_type = #tpu.core_type<tc>, window_params = [{transform_indices = @transform_0, window_bounds = array<i64: 1, 8, 256>}, {pipeline_mode = #tpu.pipeline_mode<synchronous>, transform_indices = @transform_1, window_bounds = array<i64: 8, 1>}, {pipeline_mode = #tpu.pipeline_mode<synchronous>, transform_indices = @transform_2, window_bounds = array<i64: 8, 1>}, {transform_indices = @transform_3, window_bounds = array<i64: 1, 8, 256>}]} {
    %c0 = arith.constant 0 : index
    %c0_0 = arith.constant 0 : index
    %c0_1 = arith.constant 0 : index
    %0 = vector.load %arg1[%c0, %c0_0, %c0_1] : memref<1x8x256xbf16, #tpu.memory_space<vmem>>, vector<1x8x256xbf16>
    %1 = vector.shape_cast %0 : vector<1x8x256xbf16> to vector<8x256xbf16>
    %2 = arith.extf %1 : vector<8x256xbf16> to vector<8x256xf32>
    %c0_2 = arith.constant 0 : index
    %c0_3 = arith.constant 0 : index
    %3 = vector.load %arg2[%c0_2, %c0_3] : memref<8x1xf32, #tpu.memory_space<vmem>>, vector<8x1xf32>
    %4 = vector.broadcast %3 : vector<8x1xf32> to vector<8x256xf32>
    %5 = arith.mulf %2, %4 : vector<8x256xf32>
    %c0_4 = arith.constant 0 : index
    %c0_5 = arith.constant 0 : index
    %6 = vector.load %arg3[%c0_4, %c0_5] : memref<8x1xf32, #tpu.memory_space<vmem>>, vector<8x1xf32>
    %7 = vector.broadcast %6 : vector<8x1xf32> to vector<8x256xf32>
    %8 = arith.addf %5, %7 : vector<8x256xf32>
    %c0_6 = arith.constant 0 : index
    %c0_7 = arith.constant 0 : index
    %c0_8 = arith.constant 0 : index
    %9 = vector.load %arg4[%c0_6, %c0_7, %c0_8] : memref<1x8x256xf32, #tpu.memory_space<vmem>>, vector<1x8x256xf32>
    %10 = vector.shape_cast %9 : vector<1x8x256xf32> to vector<8x256xf32>
    %11 = vector.shape_cast %8 : vector<8x256xf32> to vector<1x8x256xf32>
    tpu.vector_store %arg4[%c0_6, %c0_7, %c0_8], %11 {strides = array<i32>} : memref<1x8x256xf32, #tpu.memory_space<vmem>>, vector<1x8x256xf32>,
    return
  }
  func.func @transform_0(%arg0: i32) -> (i32, i32, i32) {
    %c0_i32 = arith.constant 0 : i32
    %c0_i32_0 = arith.constant 0 : i32
    %c0_i32_1 = arith.constant 0 : i32
    return %arg0, %c0_i32, %c0_i32_0 : i32, i32, i32
  }
  func.func @transform_1(%arg0: i32) -> (i32, i32) {
    %c0_i32 = arith.constant 0 : i32
    %c0_i32_0 = arith.constant 0 : i32
    %c0_i32_1 = arith.constant 0 : i32
    return %c0_i32, %c0_i32_0 : i32, i32
  }
  func.func @transform_2(%arg0: i32) -> (i32, i32) {
    %c0_i32 = arith.constant 0 : i32
    %c0_i32_0 = arith.constant 0 : i32
    %c0_i32_1 = arith.constant 0 : i32
    return %c0_i32, %c0_i32_0 : i32, i32
  }
  func.func @transform_3(%arg0: i32) -> (i32, i32, i32) {
    %c0_i32 = arith.constant 0 : i32
    %c0_i32_0 = arith.constant 0 : i32
    %c0_i32_1 = arith.constant 0 : i32
    return %arg0, %c0_i32, %c0_i32_0 : i32, i32, i32
  }
}

</mosaic_0001>

<bundles_post_ra>
// kernel: temporal_conv_forward.3
= control target key start
LH: loop header
LB: loop body
LE: loop exit
PB: predicated region body
PF: predicated region fallthrough
CT: control target
= control target key end

     0   :  { %s299_s12 = smov 0   ;;  %s322_s0 = inlined_call_operand.vmem [shape: bf16[2,8,256], index: 0, kind: input, shape index: {}]   ;;  %s323_s1 = inlined_call_operand.vmem [shape: f32[8,1], index: 1, kind: input, shape index: {}]   ;;  %s324_s2 = inlined_call_operand.vmem [shape: f32[8,1], index: 2, kind: input, shape index: {}]   ;;  %s325_s3 = inlined_call_operand.vmem [shape: f32[2,8,256], index: 3, kind: output, shape index: {}]  }
   0x1 LB: > { %s247_s13 = sadd.s32 4294967295, %s276_s12   ;;  %p251_p0 = scmp.ge.s32.totalorder %s276_s12, 1  ;;  %s276_s12 = sphi %s299_s12, %s13_s12  }
   0x2   : > { %p137_p1 = scmp.lt.s32.totalorder %s276_s12, 3 }
   0x4   : > { %p138_p2 = pnand %p251_p0, %p137_p1 }
   0x5   : > { %v174_v0 = vld [vmem:[%s323_s1] sm:$0xff] (!%p138_p2)  ;;  %v278_v1 = vmov (!%p138_p2), 0   ;;  %p161_p3 = scmp.lt.s32.totalorder (!%p138_p2), %s247_s13, 1 }
   0x6   : > { %141 = sbr.rel (%p138_p2) target bundleno = 142 (0x8e), region = 32  ;;  %269 = vset.pattern.permute.xlu0 (!%p138_p2), %v278_v1  ;;  %v182_v2 = vld [vmem:[%s324_s2] sm:$0xff] (!%p138_p2) }
   0x7   : > { %177 = vperm.xlu0 (!%p138_p2), %269, %v174_v0  }
   0xb   : > { %185 = vperm.xlu0 (!%p138_p2), %269, %v182_v2  }
   0xd   : > { %s327_s13 = smov (!%p161_p3, %s247_s13), 1 }
   0xe   : > { %s258_s18 = sshll.u32 %s327_s13, 3  ;;  %s259_s22 = sshll.u32 %s327_s13, 4 }
   0xf   : > { %s165_s21 = scalar_lea.vmem %s322_s0, %s258_s18  ;;  %s170_s25 = scalar_lea.vmem %s325_s3, %s259_s22 }
  0x10   : > { %v171_v3 = vld [vmem:[%s165_s21] sm:$0xff] }
  0x11   : > { %v172_v4 = vunpack.c.l.bf16 %v171_v3  ;;  %v173_v5 = vunpack.c.h.bf16 %v171_v3 }
  0x86   : > { %v178_v6 = vpop.permute.xlu0 %177 }
  0x87   : > { %v180_v7 = vmul.f32 %v178_v6, %v172_v4  ;;  %v181_v8 = vmul.f32 %v178_v6, %v173_v5 }
  0x8a   : > { %v186_v9 = vpop.permute.xlu0 %185 }
  0x8b   : > { %v188_v10 = vadd.f32 %v186_v9, %v180_v7  ;;  %v189_v11 = vadd.f32 %v186_v9, %v181_v8 }
  0x8d   : > { %190 = vst [vmem:[%s170_s25] sm:$0xff] %v188_v10  ;;  %191 = vst [vmem:[%s170_s25 + $0x8] sm:$0xff] %v189_v11 }
  0x8e PF: > { %s13_s12 = sadd.s32 1, %s276_s12  }
  0x8f   : > { %p10_p4 = scmp.ge.s32.totalorder %s13_s12, 4  }
  0x91   :  { %12 = sbr.rel (!%p10_p4) target bundleno = 1 (0x1), region = 62 }

// kernel: temporal_conv_forward.2
= control target key start
LH: loop header
LB: loop body
LE: loop exit
PB: predicated region body
PF: predicated region fallthrough
CT: control target
= control target key end

     0   :  { %s706_s15 = smov 0   ;;  %s751_s0 = inlined_call_operand.vmem [shape: f32[2,4,288], index: 0, kind: input, shape index: {}]   ;;  %s752_s1 = inlined_call_operand.vmem [shape: f32[3,8,4], index: 1, kind: input, shape index: {}]   ;;  %s753_s2 = inlined_call_operand.vmem [shape: bf16[2,8,256], index: 2, kind: output, shape index: {0}]   ;;  %s754_s3 = inlined_call_operand.vmem [shape: f32[2,8,1], index: 3, kind: output, shape index: {1}]   ;;  %s755_s4 = inlined_call_operand.vmem [shape: f32[2,8,1], index: 4, kind: output, shape index: {2}]  }
   0x1 LB: > { %s627_s16 = sadd.s32 4294967295, %s676_s15   ;;  %p631_p0 = scmp.ge.s32.totalorder %s676_s15, 1  ;;  %s676_s15 = sphi %s706_s15, %s15_s15  }
   0x2   : > { %p167_p1 = scmp.lt.s32.totalorder %s676_s15, 3 }
   0x4   : > { %p168_p2 = pnand %p631_p0, %p167_p1 }
   0x5   : > { %p201_p3 = scmp.lt.s32.totalorder (!%p168_p2), %s627_s16, 1  ;;  %v678_v0 = vmov (!%p168_p2), 0.0   ;;  %vm240_vm0 = vcmask (!%p168_p2), 1043456   ;;  %s679_s21 = smov (!%p168_p2), 96   ;;  %v219_v5 = vld [vmem:[%s752_s1] sm:$0xff] (!%p168_p2)  ;;  %vm236_vm1 = vcmask (!%p168_p2), 31744  }
   0x6   : > { %171 = sbr.rel (%p168_p2) target bundleno = 506 (0x1fa), region = 28  ;;  %387 = vmatprep.mubr.f32.mxu0 (!%p168_p2), %v678_v0  ;;  %309 = vmatprep.mubr.f32.mxu1 (!%p168_p2), %v678_v0  ;;  %s680_s22 = smov (!%p168_p2), 112   ;;  %vm407_vm2 = vcmask (!%p168_p2), 785408   ;;  %vm233_vm3 = vcmask (!%p168_p2), 916480   ;;  %v637_v14 = vld [vmem:[%s752_s1 + $0x8] sm:$0xff] (!%p168_p2)  ;;  %v644_v15 = vld [vmem:[%s752_s1 + $0x10] sm:$0xff] (!%p168_p2) }
   0x7   : > { %vm502_vm4 = vcmask (!%p168_p2), 7168  }
   0xd   : > { %s757_s16 = smov (!%p201_p3, %s627_s16), 1 }
   0xe   : > { %s657_s17 = smul.u32 12, %s757_s16  ;;  %s651_s29 = sshll.u32 %s757_s16, 3 }
   0xf   : > { %s210_s6 = scalar_lea.vmem %s753_s2, %s651_s29  ;;  %s214_s9 = scalar_lea.vmem %s754_s3, %s651_s29 }
  0x10   : > { %s205_s20 = scalar_lea.vmem %s751_s0, %s657_s17  ;;  %s218_s12 = scalar_lea.vmem %s755_s4, %s651_s29 }
  0x11   : > { %v397_v1 = vld [vmem:[%s205_s20 + $0x8] sm:$0xf]  ;;  %v396_v3 = vld [vmem:[%s205_s20] sm:$0xff] }
  0x12   : > { %v223_v2 = vld [vmem:[%s205_s20 + $0x8] sm:$0xf]  ;;  %405 = vrot.lane.b32.xlu1 %v397_v1, %s679_s21  ;;  %v400_v4 = vcombine.high %v396_v3, %v396_v3 }
  0x13   : > { %231 = vrot.lane.b32.xlu0 %v223_v2, %s680_s22 }
  0x14   : > { %641 = vmatprep.subr.msk.mxu0 %vm240_vm0, %v400_v4 }
  0x15   : > { %642 = vmatpush1.msk.msra.mxu0 %vm240_vm0, %v396_v3 }
  0x16   : > { %403 = vrot.lane.b32.xlu1 %v400_v4, %s679_s21  ;;  %643 = vmatmul.mubr.msk.f32.vlgmr.msra.gmra.mrb[0].mxu0 %vm236_vm1, %v219_v5 }
  0x17   : > { %229 = vrot.lane.b32.xlu0 %v400_v4, %s680_s22  ;;  %481 = vmatprep.mubr.f32.mxu0 %v678_v0 }
  0x1a   : > { %401 = vrot.lane.b32.xlu1 %v396_v3, %s679_s21 }
  0x1b   : > { %227 = vrot.lane.b32.xlu0 %v396_v3, %s680_s22 }
  0x84   : > { %v406_v6 = vpop.permute.xlu1 %405 }
  0x85   : > { %v232_v7 = vpop.permute.xlu0 %231 }
  0x88   : > { %v404_v8 = vpop.permute.xlu1 %403 }
  0x89   : > { %v230_v9 = vpop.permute.xlu0 %229  ;;  %v409_v10 = vsel %vm407_vm2, %v404_v8, %v406_v6 }
  0x8a   : > { %v235_v11 = vsel %vm233_vm3, %v230_v9, %v232_v7  ;;  %645 = vmatprep.subr.msk.mxu0 %vm240_vm0, %v409_v10 }
  0x8b   : > { %638 = vmatprep.subr.msk.mxu1 %vm240_vm0, %v235_v11 }
  0x8c   : > { %v402_v12 = vpop.permute.xlu1 %401 }
  0x8d   : > { %v228_v13 = vpop.permute.xlu0 %227  ;;  %v408_v16 = vsel %vm407_vm2, %v402_v12, %v404_v8 }
  0x8e   : > { %v234_v17 = vsel %vm233_vm3, %v228_v13, %v230_v9  ;;  %646 = vmatpush1.msk.msra.mxu0 %vm240_vm0, %v408_v16 }
  0x8f   : > { %639 = vmatpush1.msk.msra.mxu1 %vm240_vm0, %v234_v17  ;;  %647 = vmatmul.mubr.msk.f32.vlgmr.msra.gmra.mrb[0].mxu0 %vm236_vm1, %v644_v15 }
  0x90   : > { %640 = vmatmul.mubr.msk.f32.vlgmr.msra.gmra.mrb[0].mxu1 %vm236_vm1, %v637_v14 }
 0x162   : > { %v483_v19 = vpop.f32.mrb[0].mxu0 }
 0x163   : > { %v311_v18 = vpop.f32.mrb[0].mxu1  ;;  %v485_v22 = vpop.f32.mrb[1].mxu0 }
 0x164   : > { %v653_v20 = vadd.f32 %v483_v19, %v311_v18  ;;  %v313_v21 = vpop.f32.mrb[1].mxu1 }
 0x165   : > { %v654_v23 = vadd.f32 %v485_v22, %v313_v21 }
 0x166   : > { %v504_v24 = vmul.f32 %v653_v20, %v653_v20 }
 0x167   : > { %v652_v25 = vpack.c.bf16 %v654_v23, %v653_v20  ;;  %v499_v26 = vadd.f32 %v654_v23, %v653_v20  ;;  %v505_v27 = vmul.f32 %v654_v23, %v654_v23 }
 0x169   : > { %500 = vadd.xlane.f32.xlu0 %v499_v26  ;;  %v506_v28 = vadd.f32 %v505_v27, %v504_v24  ;;  %498 = vst [vmem:[%s210_s6] sm:$0xff] %v652_v25 }
 0x16b   : > { %507 = vadd.xlane.f32.xlu1 %v506_v28 }
 0x1f6   : > { %v501_v29 = vpop.xlane.xlu0 %500 }
 0x1f7   : > { %503 = vst.msk [vmem:[%s214_s9] sm:$0xff] %vm502_vm4, %v501_v29 }
 0x1f8   : > { %v508_v30 = vpop.xlane.xlu1 %507 }
 0x1f9   : > { %509 = vst.msk [vmem:[%s218_s12] sm:$0xff] %vm502_vm4, %v508_v30 }
 0x1fa PF: > { %s15_s15 = sadd.s32 1, %s676_s15  }
 0x1fb   : > { %p12_p4 = scmp.ge.s32.totalorder %s15_s15, 4  }
 0x1fd   :  { %14 = sbr.rel (!%p12_p4) target bundleno = 1 (0x1), region = 84 }

</bundles_post_ra>
